<compile_context>
chip_gen: v6e
topology: v6e:2x2x1
jax: 0.10.0
libtpu: 0.0.40
codegen_flags: <defaults>
</compile_context>

<pallas_src>
import jax
import jax.numpy as jnp
from jax.experimental import pallas as pl
from jax.experimental.pallas import tpu as pltpu


# ----------------------------------------------------------------------------
# Kernel: the serial LSTM recurrence over one (batch-tile, time-chunk) block.
# ----------------------------------------------------------------------------
def lstm_recurrence_kernel(pre_ref, whh_ref, h_out_ref, h_sc, c_sc):
    """pre_ref: (Ts, Bt, 4H) pre-activations (x @ W_ih^T + b), gate cols [i,f,o,g].
    whh_ref: (H, 4H) recurrent weight, same column order.
    h_out_ref: (1, Bt, H) final hidden state for this batch tile.
    h_sc / c_sc: (Bt, H) f32 VMEM scratch carried across time chunks."""
    t_idx = pl.program_id(1)
    Ts, Bt, G = pre_ref.shape
    H = h_out_ref.shape[2]

    @pl.when(t_idx == 0)
    def _init():
        h_sc[...] = jnp.zeros_like(h_sc)
        c_sc[...] = jnp.zeros_like(c_sc)

    whh = whh_ref[...]  # resident across the chunk loop

    # Lane mask, hoisted out of the loop: lanes [0, 3H) -> sigmoid (i, f, o),
    # lanes [3H, 4H) -> tanh (g).  Full-width EUP pushes + one select instead
    # of masked sub-vreg activation slabs.
    lane = jax.lax.broadcasted_iota(jnp.int32, (Bt, G), 1)
    is_sig = lane < 3 * H

    def step(s, carry):
        h, c = carry
        gates = pre_ref[s] + jnp.dot(h, whh, preferred_element_type=jnp.float32)
        act = jnp.where(is_sig, jax.nn.sigmoid(gates), jnp.tanh(gates))
        # 32-lane extracts (sub-vreg) — acceptable: XLU has slack on this path.
        i = act[:, 0 * H:1 * H]
        f = act[:, 1 * H:2 * H]
        o = act[:, 2 * H:3 * H]
        g = act[:, 3 * H:4 * H]
        c_new = f * c + i * g
        h_new = o * jnp.tanh(c_new)
        return h_new, c_new

    # Partial unroll: amortizes scalar loop overhead and gives the scheduler a
    # window to overlap the o/c tail of step s with the matmul issue of s+1.
    h_fin, c_fin = jax.lax.fori_loop(
        0, Ts, step, (h_sc[...], c_sc[...]), unroll=min(Ts, 8)
    )
    h_sc[...] = h_fin
    c_sc[...] = c_fin

    @pl.when(t_idx == pl.num_programs(1) - 1)
    def _finalize():
        h_out_ref[0] = h_fin.astype(h_out_ref.dtype)


# ----------------------------------------------------------------------------
# One-time parameter prep (call at module construction, NOT per forward).
# ----------------------------------------------------------------------------
def prepare_encoder_params(w_ih, w_hh, b_ih, b_hh):
    """PyTorch layout: w_ih (4H, F), w_hh (4H, H), b_* (4H,), gate order [i,f,g,o].
    Returns transposed weights / fused bias with gate columns reordered to
    [i, f, o, g] so the tanh gate occupies the last contiguous H lanes."""

    def reorder_cols(m):
        i, f, g, o = jnp.split(m, 4, axis=-1)
        return jnp.concatenate([i, f, o, g], axis=-1)

    wih_t = reorder_cols(jnp.transpose(w_ih).astype(jnp.float32))   # (F, 4H)
    whh_t = reorder_cols(jnp.transpose(w_hh).astype(jnp.float32))   # (H, 4H)
    bias = reorder_cols((b_ih + b_hh).astype(jnp.float32))          # (4H,)
    return {"wih_t": wih_t, "whh_t": whh_t, "bias": bias}


def _round_up(x, m):
    return ((x + m - 1) // m) * m


def _largest_divisor_leq(n, cap):
    for d in range(min(n, cap), 0, -1):
        if n % d == 0:
            return d
    return 1


# ----------------------------------------------------------------------------
# Forward pass: input projection (big XLA GEMM) + Pallas recurrence.
# ----------------------------------------------------------------------------
def encoder_forward(params, input_seq, *, max_time_chunk=128):
    """input_seq: (B, S, F). Returns h_n of shape (1, B, H) — matches
    `hidden_cell[0]` of the PyTorch Encoder."""
    B, S, F = input_seq.shape
    wih_t, whh_t, bias = params["wih_t"], params["whh_t"], params["bias"]
    H = whh_t.shape[0]
    G = 4 * H

    # Batch padding / tiling: pad to the 8-sublane width; tile the batch so a
    # leading "parallel" grid axis can shard independent recurrences across
    # TensorCores on v7x (a single tile at small B).
    Bp = _round_up(max(B, 1), 8)
    if Bp <= 128:
        Bt = Bp
    else:
        Bt = 128
        Bp = _round_up(Bp, Bt)

    # Time chunking: largest divisor of S that fits the chunk cap, so long
    # sequences pipeline chunk DMA with compute and bound VMEM residency.
    Ts = _largest_divisor_leq(S, max_time_chunk)

    # Input projection + bias hoisted out of the recurrence: one well-shaped
    # GEMM over the whole sequence, time-major output (S, B, 4H).
    x = input_seq.astype(jnp.float32)
    pre = jnp.einsum("bsf,fg->sbg", x, wih_t) + bias
    if Bp != B:
        # Padded rows carry pre = 0 -> recurrence stays finite (h stays ~0);
        # they are sliced off below.
        pre = jnp.pad(pre, ((0, 0), (0, Bp - B), (0, 0)))

    grid = (Bp // Bt, S // Ts)

    h_pad = pl.pallas_call(
        lstm_recurrence_kernel,
        out_shape=jax.ShapeDtypeStruct((1, Bp, H), input_seq.dtype),
        grid_spec=pltpu.PrefetchScalarGridSpec(
            num_scalar_prefetch=0,
            grid=grid,
            in_specs=[
                pl.BlockSpec((Ts, Bt, G), lambda b, t: (t, b, 0)),
                pl.BlockSpec((H, G), lambda b, t: (0, 0)),
            ],
            out_specs=pl.BlockSpec((1, Bt, H), lambda b, t: (0, b, 0)),
            scratch_shapes=[
                pltpu.VMEM((Bt, H), jnp.float32),  # h carry
                pltpu.VMEM((Bt, H), jnp.float32),  # c carry
            ],
        ),
        compiler_params=pltpu.CompilerParams(
            dimension_semantics=("parallel", "arbitrary"),
        ),
    )(pre, whh_t)

    return h_pad[:, :B, :]


# ----------------------------------------------------------------------------
# Pure-JAX reference (PyTorch gate order) for correctness checking.
# ----------------------------------------------------------------------------
def encoder_forward_ref(input_seq, w_ih, w_hh, b_ih, b_hh):
    B, S, F = input_seq.shape
    H = w_hh.shape[1]
    wi_t = w_ih.T
    wh_t = w_hh.T
    b = b_ih + b_hh

    def step(carry, x_t):
        h, c = carry
        gates = x_t @ wi_t + h @ wh_t + b
        i = jax.nn.sigmoid(gates[:, 0 * H:1 * H])
        f = jax.nn.sigmoid(gates[:, 1 * H:2 * H])
        g = jnp.tanh(gates[:, 2 * H:3 * H])
        o = jax.nn.sigmoid(gates[:, 3 * H:4 * H])
        c = f * c + i * g
        h = o * jnp.tanh(c)
        return (h, c), None

    init = (jnp.zeros((B, H), jnp.float32), jnp.zeros((B, H), jnp.float32))
    (h, _), _ = jax.lax.scan(step, init, jnp.transpose(input_seq, (1, 0, 2)))
    return h[None]


if __name__ == "__main__":
    # Small shapes consistent with the module: Encoder(hidden_size=32, nb_feature=8)
    hidden_size = 32
    nb_feature = 8
    batch = 2
    seq = 8

    key = jax.random.PRNGKey(0)
    k_x, k_wih, k_whh, k_bih, k_bhh = jax.random.split(key, 5)

    # Deterministic init mimicking PyTorch's uniform(-1/sqrt(H), 1/sqrt(H)).
    bound = 1.0 / jnp.sqrt(jnp.float32(hidden_size))
    w_ih = jax.random.uniform(k_wih, (4 * hidden_size, nb_feature),
                              jnp.float32, -bound, bound)
    w_hh = jax.random.uniform(k_whh, (4 * hidden_size, hidden_size),
                              jnp.float32, -bound, bound)
    b_ih = jax.random.uniform(k_bih, (4 * hidden_size,), jnp.float32, -bound, bound)
    b_hh = jax.random.uniform(k_bhh, (4 * hidden_size,), jnp.float32, -bound, bound)

    input_seq = jax.random.normal(k_x, (batch, seq, nb_feature), jnp.float32)

    # Weight prep done once (module-construction time), not per forward call.
    params = prepare_encoder_params(w_ih, w_hh, b_ih, b_hh)

    h_n = encoder_forward(params, input_seq)
    h_n = jax.block_until_ready(h_n)

    h_ref = encoder_forward_ref(input_seq, w_ih, w_hh, b_ih, b_hh)
    assert h_n.shape == (1, batch, hidden_size)
    assert jnp.allclose(h_n, h_ref, atol=1e-5, rtol=1e-5), "mismatch vs reference LSTM"

    print("KERNEL_OK")
</pallas_src>

<mosaic_0001>
module attributes {stable_mosaic.version = 11 : i64} {
  func.func @lstm_recurrence_kernel(%arg0: i32, %arg1: i32, %arg2: memref<8x8x128xf32, #tpu.memory_space<vmem>>, %arg3: memref<32x128xf32, #tpu.memory_space<vmem>>, %arg4: memref<1x8x32xf32, #tpu.memory_space<vmem>>, %arg5: memref<8x32xf32, #tpu.memory_space<vmem>>, %arg6: memref<8x32xf32, #tpu.memory_space<vmem>>) attributes {dimension_semantics = [#tpu.dimension_semantics<parallel>, #tpu.dimension_semantics<arbitrary>], iteration_bounds = array<i64: 1, 1>, scalar_prefetch = 0 : i64, scratch_operands = 2 : i64, tpu.core_type = #tpu.core_type<tc>, window_params = [{transform_indices = @transform_0, window_bounds = array<i64: 8, 8, 128>}, {pipeline_mode = #tpu.pipeline_mode<synchronous>, transform_indices = @transform_1, window_bounds = array<i64: 32, 128>}, {transform_indices = @transform_2, window_bounds = array<i64: 1, 8, 32>}]} {
    %c0_i32 = arith.constant 0 : i32
    %0 = arith.cmpi eq, %arg1, %c0_i32 : i32
    %1 = arith.extui %0 : i1 to i32
    %c0_i32_0 = arith.constant 0 : i32
    %2 = arith.cmpi ne, %1, %c0_i32_0 : i32
    scf.if %2 {
      %cst_44 = arith.constant 0.000000e+00 : f32
      %182 = vector.broadcast %cst_44 : f32 to vector<8x32xf32>
      %c0_45 = arith.constant 0 : index
      %c0_46 = arith.constant 0 : index
      %183 = vector.load %arg5[%c0_45, %c0_46] : memref<8x32xf32, #tpu.memory_space<vmem>>, vector<8x32xf32>
      tpu.vector_store %arg5[%c0_45, %c0_46], %182 {strides = array<i32>} : memref<8x32xf32, #tpu.memory_space<vmem>>, vector<8x32xf32>,
      %cst_47 = arith.constant 0.000000e+00 : f32
      %184 = vector.broadcast %cst_47 : f32 to vector<8x32xf32>
      %c0_48 = arith.constant 0 : index
      %c0_49 = arith.constant 0 : index
      %185 = vector.load %arg6[%c0_48, %c0_49] : memref<8x32xf32, #tpu.memory_space<vmem>>, vector<8x32xf32>
      tpu.vector_store %arg6[%c0_48, %c0_49], %184 {strides = array<i32>} : memref<8x32xf32, #tpu.memory_space<vmem>>, vector<8x32xf32>,
    } else {
    }
    %c0 = arith.constant 0 : index
    %c0_1 = arith.constant 0 : index
    %3 = vector.load %arg3[%c0, %c0_1] : memref<32x128xf32, #tpu.memory_space<vmem>>, vector<32x128xf32>
    %4 = tpu.iota {dimensions = array<i32: 1>} : vector<8x128xi32>
    %c96_i32 = arith.constant 96 : i32
    %5 = vector.broadcast %c96_i32 : i32 to vector<8x128xi32>
    %6 = arith.cmpi slt, %4, %5 : vector<8x128xi32>
    %c0_2 = arith.constant 0 : index
    %c0_3 = arith.constant 0 : index
    %7 = vector.load %arg5[%c0_2, %c0_3] : memref<8x32xf32, #tpu.memory_space<vmem>>, vector<8x32xf32>
    %c0_4 = arith.constant 0 : index
    %c0_5 = arith.constant 0 : index
    %8 = vector.load %arg6[%c0_4, %c0_5] : memref<8x32xf32, #tpu.memory_space<vmem>>, vector<8x32xf32>
    %c0_i32_6 = arith.constant 0 : i32
    %9 = arith.index_cast %c0_i32_6 : i32 to index
    %c0_7 = arith.constant 0 : index
    %c0_8 = arith.constant 0 : index
    %10 = vector.load %arg2[%9, %c0_7, %c0_8] : memref<8x8x128xf32, #tpu.memory_space<vmem>>, vector<1x8x128xf32>
    %11 = vector.shape_cast %10 : vector<1x8x128xf32> to vector<8x128xf32>
    %cst = arith.constant dense<0.000000e+00> : vector<8x128xf32>
    %12 = tpu.matmul %7, %3, %cst {dimension_numbers = #tpu.dot_dimension_numbers<[1], [0], [0], [1], [0, 0, 1, 1], [], []>} : vector<8x32xf32>, vector<32x128xf32>, vector<8x128xf32> -> vector<8x128xf32>
    %13 = arith.addf %11, %12 : vector<8x128xf32>
    %14 = arith.negf %13 : vector<8x128xf32>
    %15 = math.exp %14 : vector<8x128xf32>
    %cst_9 = arith.constant 1.000000e+00 : f32
    %16 = vector.broadcast %cst_9 : f32 to vector<8x128xf32>
    %17 = arith.addf %16, %15 : vector<8x128xf32>
    %18 = arith.divf %16, %17 : vector<8x128xf32>
    %19 = math.tanh %13 : vector<8x128xf32>
    %20 = arith.select %6, %18, %19 : vector<8x128xi1>, vector<8x128xf32>
    %21 = vector.extract_strided_slice %20 {offsets = [0, 0], sizes = [8, 32], strides = [1, 1]} : vector<8x128xf32> to vector<8x32xf32>
    %22 = vector.extract_strided_slice %20 {offsets = [0, 32], sizes = [8, 32], strides = [1, 1]} : vector<8x128xf32> to vector<8x32xf32>
    %23 = vector.extract_strided_slice %20 {offsets = [0, 64], sizes = [8, 32], strides = [1, 1]} : vector<8x128xf32> to vector<8x32xf32>
    %24 = vector.extract_strided_slice %20 {offsets = [0, 96], sizes = [8, 32], strides = [1, 1]} : vector<8x128xf32> to vector<8x32xf32>
    %25 = arith.mulf %22, %8 : vector<8x32xf32>
    %26 = arith.mulf %21, %24 : vector<8x32xf32>
    %27 = arith.addf %25, %26 : vector<8x32xf32>
    %28 = math.tanh %27 : vector<8x32xf32>
    %29 = arith.mulf %23, %28 : vector<8x32xf32>
    %c1_i32 = arith.constant 1 : i32
    %30 = arith.index_cast %c1_i32 : i32 to index
    %c0_10 = arith.constant 0 : index
    %c0_11 = arith.constant 0 : index
    %31 = vector.load %arg2[%30, %c0_10, %c0_11] : memref<8x8x128xf32, #tpu.memory_space<vmem>>, vector<1x8x128xf32>
    %32 = vector.shape_cast %31 : vector<1x8x128xf32> to vector<8x128xf32>
    %cst_12 = arith.constant dense<0.000000e+00> : vector<8x128xf32>
    %33 = tpu.matmul %29, %3, %cst_12 {dimension_numbers = #tpu.dot_dimension_numbers<[1], [0], [0], [1], [0, 0, 1, 1], [], []>} : vector<8x32xf32>, vector<32x128xf32>, vector<8x128xf32> -> vector<8x128xf32>
    %34 = arith.addf %32, %33 : vector<8x128xf32>
    %35 = arith.negf %34 : vector<8x128xf32>
    %36 = math.exp %35 : vector<8x128xf32>
    %cst_13 = arith.constant 1.000000e+00 : f32
    %37 = vector.broadcast %cst_13 : f32 to vector<8x128xf32>
    %38 = arith.addf %37, %36 : vector<8x128xf32>
    %39 = arith.divf %37, %38 : vector<8x128xf32>
    %40 = math.tanh %34 : vector<8x128xf32>
    %41 = arith.select %6, %39, %40 : vector<8x128xi1>, vector<8x128xf32>
    %42 = vector.extract_strided_slice %41 {offsets = [0, 0], sizes = [8, 32], strides = [1, 1]} : vector<8x128xf32> to vector<8x32xf32>
    %43 = vector.extract_strided_slice %41 {offsets = [0, 32], sizes = [8, 32], strides = [1, 1]} : vector<8x128xf32> to vector<8x32xf32>
    %44 = vector.extract_strided_slice %41 {offsets = [0, 64], sizes = [8, 32], strides = [1, 1]} : vector<8x128xf32> to vector<8x32xf32>
    %45 = vector.extract_strided_slice %41 {offsets = [0, 96], sizes = [8, 32], strides = [1, 1]} : vector<8x128xf32> to vector<8x32xf32>
    %46 = arith.mulf %43, %27 : vector<8x32xf32>
    %47 = arith.mulf %42, %45 : vector<8x32xf32>
    %48 = arith.addf %46, %47 : vector<8x32xf32>
    %49 = math.tanh %48 : vector<8x32xf32>
    %50 = arith.mulf %44, %49 : vector<8x32xf32>
    %c2_i32 = arith.constant 2 : i32
    %51 = arith.index_cast %c2_i32 : i32 to index
    %c0_14 = arith.constant 0 : index
    %c0_15 = arith.constant 0 : index
    %52 = vector.load %arg2[%51, %c0_14, %c0_15] : memref<8x8x128xf32, #tpu.memory_space<vmem>>, vector<1x8x128xf32>
    %53 = vector.shape_cast %52 : vector<1x8x128xf32> to vector<8x128xf32>
    %cst_16 = arith.constant dense<0.000000e+00> : vector<8x128xf32>
    %54 = tpu.matmul %50, %3, %cst_16 {dimension_numbers = #tpu.dot_dimension_numbers<[1], [0], [0], [1], [0, 0, 1, 1], [], []>} : vector<8x32xf32>, vector<32x128xf32>, vector<8x128xf32> -> vector<8x128xf32>
    %55 = arith.addf %53, %54 : vector<8x128xf32>
    %56 = arith.negf %55 : vector<8x128xf32>
    %57 = math.exp %56 : vector<8x128xf32>
    %cst_17 = arith.constant 1.000000e+00 : f32
    %58 = vector.broadcast %cst_17 : f32 to vector<8x128xf32>
    %59 = arith.addf %58, %57 : vector<8x128xf32>
    %60 = arith.divf %58, %59 : vector<8x128xf32>
    %61 = math.tanh %55 : vector<8x128xf32>
    %62 = arith.select %6, %60, %61 : vector<8x128xi1>, vector<8x128xf32>
    %63 = vector.extract_strided_slice %62 {offsets = [0, 0], sizes = [8, 32], strides = [1, 1]} : vector<8x128xf32> to vector<8x32xf32>
    %64 = vector.extract_strided_slice %62 {offsets = [0, 32], sizes = [8, 32], strides = [1, 1]} : vector<8x128xf32> to vector<8x32xf32>
    %65 = vector.extract_strided_slice %62 {offsets = [0, 64], sizes = [8, 32], strides = [1, 1]} : vector<8x128xf32> to vector<8x32xf32>
    %66 = vector.extract_strided_slice %62 {offsets = [0, 96], sizes = [8, 32], strides = [1, 1]} : vector<8x128xf32> to vector<8x32xf32>
    %67 = arith.mulf %64, %48 : vector<8x32xf32>
    %68 = arith.mulf %63, %66 : vector<8x32xf32>
    %69 = arith.addf %67, %68 : vector<8x32xf32>
    %70 = math.tanh %69 : vector<8x32xf32>
    %71 = arith.mulf %65, %70 : vector<8x32xf32>
    %c3_i32 = arith.constant 3 : i32
    %72 = arith.index_cast %c3_i32 : i32 to index
    %c0_18 = arith.constant 0 : index
    %c0_19 = arith.constant 0 : index
    %73 = vector.load %arg2[%72, %c0_18, %c0_19] : memref<8x8x128xf32, #tpu.memory_space<vmem>>, vector<1x8x128xf32>
    %74 = vector.shape_cast %73 : vector<1x8x128xf32> to vector<8x128xf32>
    %cst_20 = arith.constant dense<0.000000e+00> : vector<8x128xf32>
    %75 = tpu.matmul %71, %3, %cst_20 {dimension_numbers = #tpu.dot_dimension_numbers<[1], [0], [0], [1], [0, 0, 1, 1], [], []>} : vector<8x32xf32>, vector<32x128xf32>, vector<8x128xf32> -> vector<8x128xf32>
    %76 = arith.addf %74, %75 : vector<8x128xf32>
    %77 = arith.negf %76 : vector<8x128xf32>
    %78 = math.exp %77 : vector<8x128xf32>
    %cst_21 = arith.constant 1.000000e+00 : f32
    %79 = vector.broadcast %cst_21 : f32 to vector<8x128xf32>
    %80 = arith.addf %79, %78 : vector<8x128xf32>
    %81 = arith.divf %79, %80 : vector<8x128xf32>
    %82 = math.tanh %76 : vector<8x128xf32>
    %83 = arith.select %6, %81, %82 : vector<8x128xi1>, vector<8x128xf32>
    %84 = vector.extract_strided_slice %83 {offsets = [0, 0], sizes = [8, 32], strides = [1, 1]} : vector<8x128xf32> to vector<8x32xf32>
    %85 = vector.extract_strided_slice %83 {offsets = [0, 32], sizes = [8, 32], strides = [1, 1]} : vector<8x128xf32> to vector<8x32xf32>
    %86 = vector.extract_strided_slice %83 {offsets = [0, 64], sizes = [8, 32], strides = [1, 1]} : vector<8x128xf32> to vector<8x32xf32>
    %87 = vector.extract_strided_slice %83 {offsets = [0, 96], sizes = [8, 32], strides = [1, 1]} : vector<8x128xf32> to vector<8x32xf32>
    %88 = arith.mulf %85, %69 : vector<8x32xf32>
    %89 = arith.mulf %84, %87 : vector<8x32xf32>
    %90 = arith.addf %88, %89 : vector<8x32xf32>
    %91 = math.tanh %90 : vector<8x32xf32>
    %92 = arith.mulf %86, %91 : vector<8x32xf32>
    %c4_i32 = arith.constant 4 : i32
    %93 = arith.index_cast %c4_i32 : i32 to index
    %c0_22 = arith.constant 0 : index
    %c0_23 = arith.constant 0 : index
    %94 = vector.load %arg2[%93, %c0_22, %c0_23] : memref<8x8x128xf32, #tpu.memory_space<vmem>>, vector<1x8x128xf32>
    %95 = vector.shape_cast %94 : vector<1x8x128xf32> to vector<8x128xf32>
    %cst_24 = arith.constant dense<0.000000e+00> : vector<8x128xf32>
    %96 = tpu.matmul %92, %3, %cst_24 {dimension_numbers = #tpu.dot_dimension_numbers<[1], [0], [0], [1], [0, 0, 1, 1], [], []>} : vector<8x32xf32>, vector<32x128xf32>, vector<8x128xf32> -> vector<8x128xf32>
    %97 = arith.addf %95, %96 : vector<8x128xf32>
    %98 = arith.negf %97 : vector<8x128xf32>
    %99 = math.exp %98 : vector<8x128xf32>
    %cst_25 = arith.constant 1.000000e+00 : f32
    %100 = vector.broadcast %cst_25 : f32 to vector<8x128xf32>
    %101 = arith.addf %100, %99 : vector<8x128xf32>
    %102 = arith.divf %100, %101 : vector<8x128xf32>
    %103 = math.tanh %97 : vector<8x128xf32>
    %104 = arith.select %6, %102, %103 : vector<8x128xi1>, vector<8x128xf32>
    %105 = vector.extract_strided_slice %104 {offsets = [0, 0], sizes = [8, 32], strides = [1, 1]} : vector<8x128xf32> to vector<8x32xf32>
    %106 = vector.extract_strided_slice %104 {offsets = [0, 32], sizes = [8, 32], strides = [1, 1]} : vector<8x128xf32> to vector<8x32xf32>
    %107 = vector.extract_strided_slice %104 {offsets = [0, 64], sizes = [8, 32], strides = [1, 1]} : vector<8x128xf32> to vector<8x32xf32>
    %108 = vector.extract_strided_slice %104 {offsets = [0, 96], sizes = [8, 32], strides = [1, 1]} : vector<8x128xf32> to vector<8x32xf32>
    %109 = arith.mulf %106, %90 : vector<8x32xf32>
    %110 = arith.mulf %105, %108 : vector<8x32xf32>
    %111 = arith.addf %109, %110 : vector<8x32xf32>
    %112 = math.tanh %111 : vector<8x32xf32>
    %113 = arith.mulf %107, %112 : vector<8x32xf32>
    %c5_i32 = arith.constant 5 : i32
    %114 = arith.index_cast %c5_i32 : i32 to index
    %c0_26 = arith.constant 0 : index
    %c0_27 = arith.constant 0 : index
    %115 = vector.load %arg2[%114, %c0_26, %c0_27] : memref<8x8x128xf32, #tpu.memory_space<vmem>>, vector<1x8x128xf32>
    %116 = vector.shape_cast %115 : vector<1x8x128xf32> to vector<8x128xf32>
    %cst_28 = arith.constant dense<0.000000e+00> : vector<8x128xf32>
    %117 = tpu.matmul %113, %3, %cst_28 {dimension_numbers = #tpu.dot_dimension_numbers<[1], [0], [0], [1], [0, 0, 1, 1], [], []>} : vector<8x32xf32>, vector<32x128xf32>, vector<8x128xf32> -> vector<8x128xf32>
    %118 = arith.addf %116, %117 : vector<8x128xf32>
    %119 = arith.negf %118 : vector<8x128xf32>
    %120 = math.exp %119 : vector<8x128xf32>
    %cst_29 = arith.constant 1.000000e+00 : f32
    %121 = vector.broadcast %cst_29 : f32 to vector<8x128xf32>
    %122 = arith.addf %121, %120 : vector<8x128xf32>
    %123 = arith.divf %121, %122 : vector<8x128xf32>
    %124 = math.tanh %118 : vector<8x128xf32>
    %125 = arith.select %6, %123, %124 : vector<8x128xi1>, vector<8x128xf32>
    %126 = vector.extract_strided_slice %125 {offsets = [0, 0], sizes = [8, 32], strides = [1, 1]} : vector<8x128xf32> to vector<8x32xf32>
    %127 = vector.extract_strided_slice %125 {offsets = [0, 32], sizes = [8, 32], strides = [1, 1]} : vector<8x128xf32> to vector<8x32xf32>
    %128 = vector.extract_strided_slice %125 {offsets = [0, 64], sizes = [8, 32], strides = [1, 1]} : vector<8x128xf32> to vector<8x32xf32>
    %129 = vector.extract_strided_slice %125 {offsets = [0, 96], sizes = [8, 32], strides = [1, 1]} : vector<8x128xf32> to vector<8x32xf32>
    %130 = arith.mulf %127, %111 : vector<8x32xf32>
    %131 = arith.mulf %126, %129 : vector<8x32xf32>
    %132 = arith.addf %130, %131 : vector<8x32xf32>
    %133 = math.tanh %132 : vector<8x32xf32>
    %134 = arith.mulf %128, %133 : vector<8x32xf32>
    %c6_i32 = arith.constant 6 : i32
    %135 = arith.index_cast %c6_i32 : i32 to index
    %c0_30 = arith.constant 0 : index
    %c0_31 = arith.constant 0 : index
    %136 = vector.load %arg2[%135, %c0_30, %c0_31] : memref<8x8x128xf32, #tpu.memory_space<vmem>>, vector<1x8x128xf32>
    %137 = vector.shape_cast %136 : vector<1x8x128xf32> to vector<8x128xf32>
    %cst_32 = arith.constant dense<0.000000e+00> : vector<8x128xf32>
    %138 = tpu.matmul %134, %3, %cst_32 {dimension_numbers = #tpu.dot_dimension_numbers<[1], [0], [0], [1], [0, 0, 1, 1], [], []>} : vector<8x32xf32>, vector<32x128xf32>, vector<8x128xf32> -> vector<8x128xf32>
    %139 = arith.addf %137, %138 : vector<8x128xf32>
    %140 = arith.negf %139 : vector<8x128xf32>
    %141 = math.exp %140 : vector<8x128xf32>
    %cst_33 = arith.constant 1.000000e+00 : f32
    %142 = vector.broadcast %cst_33 : f32 to vector<8x128xf32>
    %143 = arith.addf %142, %141 : vector<8x128xf32>
    %144 = arith.divf %142, %143 : vector<8x128xf32>
    %145 = math.tanh %139 : vector<8x128xf32>
    %146 = arith.select %6, %144, %145 : vector<8x128xi1>, vector<8x128xf32>
    %147 = vector.extract_strided_slice %146 {offsets = [0, 0], sizes = [8, 32], strides = [1, 1]} : vector<8x128xf32> to vector<8x32xf32>
    %148 = vector.extract_strided_slice %146 {offsets = [0, 32], sizes = [8, 32], strides = [1, 1]} : vector<8x128xf32> to vector<8x32xf32>
    %149 = vector.extract_strided_slice %146 {offsets = [0, 64], sizes = [8, 32], strides = [1, 1]} : vector<8x128xf32> to vector<8x32xf32>
    %150 = vector.extract_strided_slice %146 {offsets = [0, 96], sizes = [8, 32], strides = [1, 1]} : vector<8x128xf32> to vector<8x32xf32>
    %151 = arith.mulf %148, %132 : vector<8x32xf32>
    %152 = arith.mulf %147, %150 : vector<8x32xf32>
    %153 = arith.addf %151, %152 : vector<8x32xf32>
    %154 = math.tanh %153 : vector<8x32xf32>
    %155 = arith.mulf %149, %154 : vector<8x32xf32>
    %c7_i32 = arith.constant 7 : i32
    %156 = arith.index_cast %c7_i32 : i32 to index
    %c0_34 = arith.constant 0 : index
    %c0_35 = arith.constant 0 : index
    %157 = vector.load %arg2[%156, %c0_34, %c0_35] : memref<8x8x128xf32, #tpu.memory_space<vmem>>, vector<1x8x128xf32>
    %158 = vector.shape_cast %157 : vector<1x8x128xf32> to vector<8x128xf32>
    %cst_36 = arith.constant dense<0.000000e+00> : vector<8x128xf32>
    %159 = tpu.matmul %155, %3, %cst_36 {dimension_numbers = #tpu.dot_dimension_numbers<[1], [0], [0], [1], [0, 0, 1, 1], [], []>} : vector<8x32xf32>, vector<32x128xf32>, vector<8x128xf32> -> vector<8x128xf32>
    %160 = arith.addf %158, %159 : vector<8x128xf32>
    %161 = arith.negf %160 : vector<8x128xf32>
    %162 = math.exp %161 : vector<8x128xf32>
    %cst_37 = arith.constant 1.000000e+00 : f32
    %163 = vector.broadcast %cst_37 : f32 to vector<8x128xf32>
    %164 = arith.addf %163, %162 : vector<8x128xf32>
    %165 = arith.divf %163, %164 : vector<8x128xf32>
    %166 = math.tanh %160 : vector<8x128xf32>
    %167 = arith.select %6, %165, %166 : vector<8x128xi1>, vector<8x128xf32>
    %168 = vector.extract_strided_slice %167 {offsets = [0, 0], sizes = [8, 32], strides = [1, 1]} : vector<8x128xf32> to vector<8x32xf32>
    %169 = vector.extract_strided_slice %167 {offsets = [0, 32], sizes = [8, 32], strides = [1, 1]} : vector<8x128xf32> to vector<8x32xf32>
    %170 = vector.extract_strided_slice %167 {offsets = [0, 64], sizes = [8, 32], strides = [1, 1]} : vector<8x128xf32> to vector<8x32xf32>
    %171 = vector.extract_strided_slice %167 {offsets = [0, 96], sizes = [8, 32], strides = [1, 1]} : vector<8x128xf32> to vector<8x32xf32>
    %172 = arith.mulf %169, %153 : vector<8x32xf32>
    %173 = arith.mulf %168, %171 : vector<8x32xf32>
    %174 = arith.addf %172, %173 : vector<8x32xf32>
    %175 = math.tanh %174 : vector<8x32xf32>
    %176 = arith.mulf %170, %175 : vector<8x32xf32>
    %c8_i32 = arith.constant 8 : i32
    %c0_38 = arith.constant 0 : index
    %c0_39 = arith.constant 0 : index
    %177 = vector.load %arg5[%c0_38, %c0_39] : memref<8x32xf32, #tpu.memory_space<vmem>>, vector<8x32xf32>
    tpu.vector_store %arg5[%c0_38, %c0_39], %176 {strides = array<i32>} : memref<8x32xf32, #tpu.memory_space<vmem>>, vector<8x32xf32>,
    %c0_40 = arith.constant 0 : index
    %c0_41 = arith.constant 0 : index
    %178 = vector.load %arg6[%c0_40, %c0_41] : memref<8x32xf32, #tpu.memory_space<vmem>>, vector<8x32xf32>
    tpu.vector_store %arg6[%c0_40, %c0_41], %174 {strides = array<i32>} : memref<8x32xf32, #tpu.memory_space<vmem>>, vector<8x32xf32>,
    %c0_i32_42 = arith.constant 0 : i32
    %179 = arith.cmpi eq, %arg1, %c0_i32_42 : i32
    %180 = arith.extui %179 : i1 to i32
    %c0_i32_43 = arith.constant 0 : i32
    %181 = arith.cmpi ne, %180, %c0_i32_43 : i32
    scf.if %181 {
      %c0_44 = arith.constant 0 : index
      %c0_45 = arith.constant 0 : index
      %c0_46 = arith.constant 0 : index
      %182 = vector.load %arg4[%c0_44, %c0_45, %c0_46] : memref<1x8x32xf32, #tpu.memory_space<vmem>>, vector<1x8x32xf32>
      %183 = vector.shape_cast %182 : vector<1x8x32xf32> to vector<8x32xf32>
      %184 = vector.shape_cast %176 : vector<8x32xf32> to vector<1x8x32xf32>
      tpu.vector_store %arg4[%c0_44, %c0_45, %c0_46], %184 {strides = array<i32>} : memref<1x8x32xf32, #tpu.memory_space<vmem>>, vector<1x8x32xf32>,
    } else {
    }
    return
  }
  func.func @transform_0(%arg0: i32, %arg1: i32) -> (i32, i32, i32) {
    %c0_i32 = arith.constant 0 : i32
    %c0_i32_0 = arith.constant 0 : i32
    return %arg1, %arg0, %c0_i32 : i32, i32, i32
  }
  func.func @transform_1(%arg0: i32, %arg1: i32) -> (i32, i32) {
    %c0_i32 = arith.constant 0 : i32
    %c0_i32_0 = arith.constant 0 : i32
    %c0_i32_1 = arith.constant 0 : i32
    return %c0_i32, %c0_i32_0 : i32, i32
  }
  func.func @transform_2(%arg0: i32, %arg1: i32) -> (i32, i32, i32) {
    %c0_i32 = arith.constant 0 : i32
    %c0_i32_0 = arith.constant 0 : i32
    %c0_i32_1 = arith.constant 0 : i32
    return %c0_i32, %arg0, %c0_i32_0 : i32, i32, i32
  }
}

</mosaic_0001>

<bundles_post_ra>
// kernel: tpu_custom_call.1
= control target key start
LH: loop header
LB: loop body
LE: loop exit
PB: predicated region body
PF: predicated region fallthrough
CT: control target
= control target key end

     0   :  { %7 = vsyncpa [#allocation5], 0  ;;  %s1385_s0 = inlined_call_operand.hbm [shape: f32[8,8,128], index: 0, kind: input, shape index: {}]   ;;  %s1386_s1 = inlined_call_operand.hbm [shape: f32[32,128], index: 1, kind: input, shape index: {}]   ;;  %s1387_s2 = inlined_call_operand.hbm [shape: f32[1,8,32], index: 2, kind: output, shape index: {}]  }
   0x1   :  { %8 = vsyncpa [#allocation8], 0 }
   0x2   :  { %9 = vsyncpa [#allocation6], 0  ;;  %s1196_s9 = smov [#allocation4]  }
   0x3   :  { %s15_s10 = sshll.u32 %s1196_s9, 4  ;;  %s16_s10 = int_to_ptr.vmem [resolvable:$true] %s15_s10 }
   0x4   :  { %s1138_s11 = scalar_lea.vmem %s16_s10, 1024  ;;  %p1143_p1 = scmp.lt.s32.totalorder %s16_s10, %s16_s10 }
   0x5   :  { %p1139_p0 = scmp.ne.s32.totalorder %s16_s10, %s1138_s11  ;;  %p1144_p2 = scmp.lt.s32.totalorder %s1138_s11, %s1138_s11 }
   0x7   :  { %p1145_p3 = por %p1144_p2, %p1143_p1 }
   0x9   :  { %p1146_p4 = pnand %p1145_p3, %p1139_p0 }
   0xb   :  { %1149 = shalt.err (!%p1146_p4)
}
   0xc   :  { %s1197_s12 = smov 128   ;;  %s1198_s13 = smov 8  }
   0xd   :  { %21 = dma.hbm_to_vmem [thread:$0]  %s1385_s0, 1024, %s16_s10, [#allocation5], %s1197_s12, %s1197_s12, %s1198_s13  }
   0xe   :  { %s1199_s16 = smov [#allocation7]  }
   0xf   :  { %s27_s17 = sshll.u32 %s1199_s16, 4  ;;  %s28_s17 = int_to_ptr.vmem [resolvable:$true] %s27_s17 }
  0x10   :  { %s1158_s18 = scalar_lea.vmem %s28_s17, 512  ;;  %p1163_p6 = scmp.lt.s32.totalorder %s28_s17, %s28_s17 }
  0x11   :  { %p1159_p5 = scmp.ne.s32.totalorder %s28_s17, %s1158_s18  ;;  %p1164_p7 = scmp.lt.s32.totalorder %s1158_s18, %s1158_s18 }
  0x13   :  { %p1165_p8 = por %p1164_p7, %p1163_p6 }
  0x15   :  { %p1166_p9 = pnand %p1165_p8, %p1159_p5 }
  0x17   :  { %1169 = shalt.err (!%p1166_p9)
}
  0x18   :  { %33 = dma.hbm_to_vmem [thread:$0]  %s1386_s1, 512, %s28_s17, [#allocation8], %s1197_s12, %s1197_s12, %s1198_s13  }
  0x19   :  { %1190 = dma.done.wait [#allocation5], 1024  }
  0x1a   :  { %1191 = vsyncadd [#allocation5], 4294966272 }
  0x1b   :  { %1192 = dma.done.wait [#allocation8], 512  }
  0x1c   :  { %1193 = vsyncadd [#allocation8], 4294966784  ;;  %vm44_vm0 = vcmask 261120   ;;  %v1200_v0 = vmov 0.0   ;;  %vm1201_vm1 = vmmov 0   ;;  %v1237_v1 = vld [vmem:[#allocation7 + $0x18] sm:$0xff]  ;;  %v51_v13 = vlaneseq }
  0x1d   :  { %968 = vmatprep.subr.mxu0 %v1200_v0  ;;  %976 = vmatprep.mubr.msk.f32.mxu0 %vm1201_vm1, %v1200_v0  ;;  %45 = vst.msk [vmem:[#allocation2] sm:$0xff] %vm44_vm0, %v1200_v0  ;;  %46 = vst.msk [vmem:[#allocation3] sm:$0xff] %vm44_vm0, %v1200_v0  ;;  %v1239_v2 = vld [vmem:[#allocation7 + $0x10] sm:$0xff]  ;;  %v1244_v3 = vld [vmem:[#allocation7 + $0x8] sm:$0xff]  ;;  %s1202_s0 = smov 32   ;;  %s1203_s1 = smov 64  }
  0x1e   :  { %979 = vmatprep.subr.mxu1 %v1200_v0  ;;  %987 = vmatprep.mubr.msk.f32.mxu1 %vm1201_vm1, %v1200_v0  ;;  %v1250_v4 = vld [vmem:[#allocation7] sm:$0xff]  ;;  %v1272_v14 = vand.u32 127, %v51_v13  ;;  %v162_v29 = vld [vmem:[#allocation4 + $0x8] sm:$0xff]  ;;  %v265_v48 = vld [vmem:[#allocation4 + $0x10] sm:$0xff]  ;;  %s1204_s21 = smov 96   ;;  %s1205_s22 = smov [#allocation9]  }
  0x1f   :  { %969 = vmatpush3.msra.mxu0 %v1237_v1  ;;  %980 = vmatpush3.msra.mxu1 %v1237_v1  ;;  %v56_v6 = vld [vmem:[#allocation4] sm:$0xff]  ;;  %s902_s23 = sshll.u32 %s1205_s22, 4  ;;  %s903_s23 = int_to_ptr.vmem [resolvable:$true] %s902_s23 }
  0x20   :  { %970 = vmatprep.subr.mxu0 %v1200_v0  ;;  %981 = vmatprep.subr.mxu1 %v1200_v0  ;;  %vm53_vm2 = vcmp.lt.s32.totalorder %v1272_v14, 96  ;;  %s1170_s24 = scalar_lea.vmem %s903_s23, 128  ;;  %p1175_p11 = scmp.lt.s32.totalorder %s903_s23, %s903_s23 }
  0x21   :  { %971 = vmatpush3.msra.mxu0 %v1239_v2  ;;  %982 = vmatpush3.msra.mxu1 %v1239_v2  ;;  %p1171_p10 = scmp.ne.s32.totalorder %s903_s23, %s1170_s24  ;;  %p1176_p12 = scmp.lt.s32.totalorder %s1170_s24, %s1170_s24 }
  0x22   :  { %972 = vmatprep.subr.mxu0 %v1200_v0  ;;  %983 = vmatprep.subr.mxu1 %v1200_v0 }
  0x23   :  { %973 = vmatpush3.msra.mxu0 %v1244_v3  ;;  %984 = vmatpush3.msra.mxu1 %v1244_v3  ;;  %p1177_p13 = por %p1176_p12, %p1175_p11 }
  0x24   :  { %v54_v5 = vld [vmem:[#allocation2] sm:$0xff]  ;;  %974 = vmatprep.subr.mxu0 %v1200_v0  ;;  %985 = vmatprep.subr.mxu1 %v1200_v0  ;;  %v55_v18 = vld [vmem:[#allocation3] sm:$0xff] }
  0x25   :  { %975 = vmatpush3.msra.mxu0 %v1250_v4  ;;  %986 = vmatpush3.msra.mxu1 %v1250_v4  ;;  %p1178_p0 = pnand %p1177_p13, %p1171_p10 }
  0x26   :  { %977 = vmatmul.mubr.msk.f32.vlgmr.msra.gmra.mxu0 %vm44_vm0, %v54_v5  ;;  %990 = vmatprep.subr.mxu0 %v1200_v0 }
  0x27   :  { %991 = vmatpush3.msra.mxu0 %v1237_v1  ;;  %998 = vmatprep.mubr.msk.f32.mxu0 %vm1201_vm1, %v1200_v0 }
  0x28   :  { %992 = vmatprep.subr.mxu0 %v1200_v0  ;;  %1001 = vmatprep.subr.mxu1 %v1200_v0 }
  0x29   :  { %993 = vmatpush3.msra.mxu0 %v1239_v2 }
  0x2a   :  { %994 = vmatprep.subr.mxu0 %v1200_v0 }
  0x2b   :  { %995 = vmatpush3.msra.mxu0 %v1244_v3 }
  0x2c   :  { %996 = vmatprep.subr.mxu0 %v1200_v0 }
  0x2d   :  { %997 = vmatpush3.msra.mxu0 %v1250_v4 }
  0x2e   :  { %1012 = vmatprep.subr.mxu0 %v1200_v0 }
  0xe6   :  { %v127_v7 = vpop.f32.mrf.mxu0 }
  0xe7   :  { %v131_v8 = vadd.f32 %v127_v7, %v56_v6 }
  0xe8   :  { %v978_v9 = vpop.f32.mrf.mxu0 }
  0xe9   :  { %v913_v10 = vmul.f32 -1.442695, %v131_v8 }
  0xeb   :  { %1066 = vpow2.f32 %v913_v10 }
  0xec   :  { %1068 = vtanh.f32 %v131_v8  ;;  %v368_v8 = vld [vmem:[#allocation4 + $0x18] sm:$0xff] }
  0xf8   :  { %v1067_v11 = vpop.eup %1066 }
  0xf9   :  { %v135_v12 = vadd.f32 1.0, %v1067_v11  ;;  %v1069_v15 = vpop.eup %1068 }
  0xfb   :  { %1070 = vrcp.f32 %v135_v12 }
 0x108   :  { %v1071_v16 = vpop.eup %1070 }
 0x109   :  { %v139_v17 = vsel %vm53_vm2, %v1071_v16, %v1069_v15 }
 0x10a   :  { %146 = vrot.lane.b32.xlu0 %v139_v17, %s1202_s0 }
 0x10e   :  { %141 = vrot.lane.b32.xlu0 %v55_v18, %s1202_s0 }
 0x17c   :  { %v147_v19 = vpop.permute.xlu0 %146 }
 0x17d   :  { %v149_v20 = vmul.f32 %v147_v19, %v139_v17 }
 0x17f   :  { %151 = vrot.lane.b32.xlu1 %v149_v20, %s1202_s0 }
 0x180   :  { %v142_v21 = vpop.permute.xlu0 %141 }
 0x181   :  { %v144_v22 = vmul.f32 %v142_v21, %v139_v17 }
 0x1f1   :  { %v152_v23 = vpop.permute.xlu1 %151 }
 0x1f2   :  { %v154_v24 = vadd.f32 %v152_v23, %v144_v22 }
 0x1f4   :  { %1072 = vtanh.f32 %v154_v24 }
 0x201   :  { %v1073_v25 = vpop.eup %1072 }
 0x202   :  { %157 = vrot.lane.b32.xlu1 %v1073_v25, %s1202_s0 }
 0x274   :  { %v158_v26 = vpop.permute.xlu1 %157 }
 0x275   :  { %v160_v27 = vmul.f32 %v158_v26, %v139_v17 }
 0x277   :  { %164 = vrot.lane.b32.xlu0 %v160_v27, %s1203_s1 }
 0x2e9   :  { %v165_v28 = vpop.permute.xlu0 %164 }
 0x2ea   :  { %988 = vmatmul.mubr.msk.f32.vlgmr.msra.gmra.mxu1 %vm44_vm0, %v165_v28  ;;  %v471_v28 = vld [vmem:[#allocation4 + $0x20] sm:$0xff] }
 0x2eb   :  { %1002 = vmatpush3.msra.mxu1 %v1237_v1  ;;  %1009 = vmatprep.mubr.msk.f32.mxu1 %vm1201_vm1, %v1200_v0 }
 0x2ec   :  { %1003 = vmatprep.subr.mxu1 %v1200_v0 }
 0x2ed   :  { %1004 = vmatpush3.msra.mxu1 %v1239_v2 }
 0x2ee   :  { %1005 = vmatprep.subr.mxu1 %v1200_v0 }
 0x2ef   :  { %1006 = vmatpush3.msra.mxu1 %v1244_v3 }
 0x2f0   :  { %1007 = vmatprep.subr.mxu1 %v1200_v0 }
 0x2f1   :  { %1008 = vmatpush3.msra.mxu1 %v1250_v4 }
 0x2f2   :  { %1023 = vmatprep.subr.mxu1 %v1200_v0 }
 0x3aa   :  { %v234_v30 = vpop.f32.mrf.mxu1 }
 0x3ab   :  { %v238_v31 = vadd.f32 %v234_v30, %v162_v29 }
 0x3ac   :  { %v989_v32 = vpop.f32.mrf.mxu1 }
 0x3ad   :  { %v915_v33 = vmul.f32 -1.442695, %v238_v31 }
 0x3af   :  { %1074 = vpow2.f32 %v915_v33 }
 0x3b0   :  { %1076 = vtanh.f32 %v238_v31 }
 0x3bc   :  { %v1075_v34 = vpop.eup %1074 }
 0x3bd   :  { %v242_v35 = vadd.f32 1.0, %v1075_v34  ;;  %v1077_v36 = vpop.eup %1076 }
 0x3bf   :  { %1078 = vrcp.f32 %v242_v35 }
 0x3cc   :  { %v1079_v37 = vpop.eup %1078 }
 0x3cd   :  { %v246_v38 = vsel %vm53_vm2, %v1079_v37, %v1077_v36 }
 0x3ce   :  { %249 = vrot.lane.b32.xlu1 %v246_v38, %s1202_s0  ;;  %v247_v41 = vmul.f32 %v246_v38, %v154_v24 }
 0x440   :  { %v250_v39 = vpop.permute.xlu1 %249 }
 0x441   :  { %v252_v40 = vmul.f32 %v250_v39, %v246_v38 }
 0x443   :  { %254 = vrot.lane.b32.xlu0 %v252_v40, %s1202_s0 }
 0x4b5   :  { %v255_v42 = vpop.permute.xlu0 %254 }
 0x4b6   :  { %v257_v43 = vadd.f32 %v255_v42, %v247_v41 }
 0x4b8   :  { %1080 = vtanh.f32 %v257_v43 }
 0x4c5   :  { %v1081_v44 = vpop.eup %1080 }
 0x4c6   :  { %260 = vrot.lane.b32.xlu1 %v1081_v44, %s1202_s0 }
 0x538   :  { %v261_v45 = vpop.permute.xlu1 %260 }
 0x539   :  { %v263_v46 = vmul.f32 %v261_v45, %v246_v38 }
 0x53b   :  { %267 = vrot.lane.b32.xlu0 %v263_v46, %s1203_s1 }
 0x5ad   :  { %v268_v47 = vpop.permute.xlu0 %267 }
 0x5ae   :  { %999 = vmatmul.mubr.msk.f32.vlgmr.msra.gmra.mxu0 %vm44_vm0, %v268_v47  ;;  %v574_v47 = vld [vmem:[#allocation4 + $0x28] sm:$0xff] }
 0x5af   :  { %1013 = vmatpush3.msra.mxu0 %v1237_v1  ;;  %1020 = vmatprep.mubr.msk.f32.mxu0 %vm1201_vm1, %v1200_v0 }
 0x5b0   :  { %1014 = vmatprep.subr.mxu0 %v1200_v0 }
 0x5b1   :  { %1015 = vmatpush3.msra.mxu0 %v1239_v2 }
 0x5b2   :  { %1016 = vmatprep.subr.mxu0 %v1200_v0 }
 0x5b3   :  { %1017 = vmatpush3.msra.mxu0 %v1244_v3 }
 0x5b4   :  { %1018 = vmatprep.subr.mxu0 %v1200_v0 }
 0x5b5   :  { %1019 = vmatpush3.msra.mxu0 %v1250_v4 }
 0x5b6   :  { %1034 = vmatprep.subr.mxu0 %v1200_v0 }
 0x66e   :  { %v337_v49 = vpop.f32.mrf.mxu0 }
 0x66f   :  { %v341_v50 = vadd.f32 %v337_v49, %v265_v48 }
 0x670   :  { %v1000_v51 = vpop.f32.mrf.mxu0 }
 0x671   :  { %v917_v52 = vmul.f32 -1.442695, %v341_v50 }
 0x673   :  { %1082 = vpow2.f32 %v917_v52 }
 0x674   :  { %1084 = vtanh.f32 %v341_v50 }
 0x680   :  { %v1083_v53 = vpop.eup %1082 }
 0x681   :  { %v345_v54 = vadd.f32 1.0, %v1083_v53  ;;  %v1085_v55 = vpop.eup %1084 }
 0x683   :  { %1086 = vrcp.f32 %v345_v54 }
 0x690   :  { %v1087_v56 = vpop.eup %1086 }
 0x691   :  { %v349_v57 = vsel %vm53_vm2, %v1087_v56, %v1085_v55 }
 0x692   :  { %352 = vrot.lane.b32.xlu1 %v349_v57, %s1202_s0  ;;  %v350_v60 = vmul.f32 %v349_v57, %v257_v43 }
 0x704   :  { %v353_v58 = vpop.permute.xlu1 %352 }
 0x705   :  { %v355_v59 = vmul.f32 %v353_v58, %v349_v57 }
 0x707   :  { %357 = vrot.lane.b32.xlu0 %v355_v59, %s1202_s0 }
 0x779   :  { %v358_v61 = vpop.permute.xlu0 %357 }
 0x77a   :  { %v360_v62 = vadd.f32 %v358_v61, %v350_v60  ;;  %v677_v61 = vld [vmem:[#allocation4 + $0x30] sm:$0xff] }
 0x77c   :  { %1088 = vtanh.f32 %v360_v62 }
 0x789   :  { %v1089_v63 = vpop.eup %1088 }
 0x78a   :  { %363 = vrot.lane.b32.xlu1 %v1089_v63, %s1202_s0 }
 0x7fc   :  { %v364_v5 = vpop.permute.xlu1 %363 }
 0x7fd   :  { %v366_v6 = vmul.f32 %v364_v5, %v349_v57 }
 0x7ff   :  { %370 = vrot.lane.b32.xlu0 %v366_v6, %s1203_s1 }
 0x871   :  { %v371_v7 = vpop.permute.xlu0 %370 }
 0x872   :  { %1010 = vmatmul.mubr.msk.f32.vlgmr.msra.gmra.mxu1 %vm44_vm0, %v371_v7 }
 0x873   :  { %1024 = vmatpush3.msra.mxu1 %v1237_v1  ;;  %1031 = vmatprep.mubr.msk.f32.mxu1 %vm1201_vm1, %v1200_v0 }
 0x874   :  { %1025 = vmatprep.subr.mxu1 %v1200_v0 }
 0x875   :  { %1026 = vmatpush3.msra.mxu1 %v1239_v2 }
 0x876   :  { %1027 = vmatprep.subr.mxu1 %v1200_v0 }
 0x877   :  { %1028 = vmatpush3.msra.mxu1 %v1244_v3 }
 0x878   :  { %1029 = vmatprep.subr.mxu1 %v1200_v0 }
 0x879   :  { %1030 = vmatpush3.msra.mxu1 %v1250_v4 }
 0x87a   :  { %1045 = vmatprep.subr.mxu1 %v1200_v0 }
 0x932   :  { %v440_v9 = vpop.f32.mrf.mxu1 }
 0x933   :  { %v444_v10 = vadd.f32 %v440_v9, %v368_v8 }
 0x934   :  { %v1011_v11 = vpop.f32.mrf.mxu1 }
 0x935   :  { %v919_v12 = vmul.f32 -1.442695, %v444_v10 }
 0x937   :  { %1090 = vpow2.f32 %v919_v12 }
 0x938   :  { %1092 = vtanh.f32 %v444_v10 }
 0x944   :  { %v1091_v13 = vpop.eup %1090 }
 0x945   :  { %v448_v15 = vadd.f32 1.0, %v1091_v13  ;;  %v1093_v16 = vpop.eup %1092 }
 0x947   :  { %1094 = vrcp.f32 %v448_v15 }
 0x954   :  { %v1095_v17 = vpop.eup %1094 }
 0x955   :  { %v452_v18 = vsel %vm53_vm2, %v1095_v17, %v1093_v16 }
 0x956   :  { %455 = vrot.lane.b32.xlu1 %v452_v18, %s1202_s0  ;;  %v453_v21 = vmul.f32 %v452_v18, %v360_v62 }
 0x9c8   :  { %v456_v19 = vpop.permute.xlu1 %455 }
 0x9c9   :  { %v458_v20 = vmul.f32 %v456_v19, %v452_v18 }
 0x9cb   :  { %460 = vrot.lane.b32.xlu0 %v458_v20, %s1202_s0 }
 0xa3d   :  { %v461_v22 = vpop.permute.xlu0 %460 }
 0xa3e   :  { %v463_v23 = vadd.f32 %v461_v22, %v453_v21  ;;  %v780_v22 = vld [vmem:[#allocation4 + $0x38] sm:$0xff] }
 0xa40   :  { %1096 = vtanh.f32 %v463_v23 }
 0xa4d   :  { %v1097_v24 = vpop.eup %1096 }
 0xa4e   :  { %466 = vrot.lane.b32.xlu1 %v1097_v24, %s1202_s0 }
 0xac0   :  { %v467_v25 = vpop.permute.xlu1 %466 }
 0xac1   :  { %v469_v26 = vmul.f32 %v467_v25, %v452_v18 }
 0xac3   :  { %473 = vrot.lane.b32.xlu0 %v469_v26, %s1203_s1 }
 0xb35   :  { %v474_v27 = vpop.permute.xlu0 %473 }
 0xb36   :  { %1021 = vmatmul.mubr.msk.f32.vlgmr.msra.gmra.mxu0 %vm44_vm0, %v474_v27 }
 0xb37   :  { %1035 = vmatpush3.msra.mxu0 %v1237_v1  ;;  %1042 = vmatprep.mubr.msk.f32.mxu0 %vm1201_vm1, %v1200_v0 }
 0xb38   :  { %1036 = vmatprep.subr.mxu0 %v1200_v0 }
 0xb39   :  { %1037 = vmatpush3.msra.mxu0 %v1239_v2 }
 0xb3a   :  { %1038 = vmatprep.subr.mxu0 %v1200_v0 }
 0xb3b   :  { %1039 = vmatpush3.msra.mxu0 %v1244_v3 }
 0xb3c   :  { %1040 = vmatprep.subr.mxu0 %v1200_v0 }
 0xb3d   :  { %1041 = vmatpush3.msra.mxu0 %v1250_v4 }
 0xbf6   :  { %v543_v29 = vpop.f32.mrf.mxu0 }
 0xbf7   :  { %v547_v30 = vadd.f32 %v543_v29, %v471_v28 }
 0xbf8   :  { %v1022_v31 = vpop.f32.mrf.mxu0 }
 0xbf9   :  { %v921_v32 = vmul.f32 -1.442695, %v547_v30 }
 0xbfb   :  { %1098 = vpow2.f32 %v921_v32 }
 0xbfc   :  { %1100 = vtanh.f32 %v547_v30 }
 0xc08   :  { %v1099_v33 = vpop.eup %1098 }
 0xc09   :  { %v551_v34 = vadd.f32 1.0, %v1099_v33  ;;  %v1101_v35 = vpop.eup %1100 }
 0xc0b   :  { %1102 = vrcp.f32 %v551_v34 }
 0xc18   :  { %v1103_v36 = vpop.eup %1102 }
 0xc19   :  { %v555_v37 = vsel %vm53_vm2, %v1103_v36, %v1101_v35 }
 0xc1a   :  { %558 = vrot.lane.b32.xlu1 %v555_v37, %s1202_s0  ;;  %v556_v40 = vmul.f32 %v555_v37, %v463_v23 }
 0xc8c   :  { %v559_v38 = vpop.permute.xlu1 %558 }
 0xc8d   :  { %v561_v39 = vmul.f32 %v559_v38, %v555_v37 }
 0xc8f   :  { %563 = vrot.lane.b32.xlu0 %v561_v39, %s1202_s0 }
 0xd01   :  { %v564_v41 = vpop.permute.xlu0 %563 }
 0xd02   :  { %v566_v42 = vadd.f32 %v564_v41, %v556_v40 }
 0xd04   :  { %1104 = vtanh.f32 %v566_v42 }
 0xd11   :  { %v1105_v43 = vpop.eup %1104 }
 0xd12   :  { %569 = vrot.lane.b32.xlu1 %v1105_v43, %s1202_s0 }
 0xd84   :  { %v570_v44 = vpop.permute.xlu1 %569 }
 0xd85   :  { %v572_v45 = vmul.f32 %v570_v44, %v555_v37 }
 0xd87   :  { %576 = vrot.lane.b32.xlu0 %v572_v45, %s1203_s1 }
 0xdf9   :  { %v577_v46 = vpop.permute.xlu0 %576 }
 0xdfa   :  { %1032 = vmatmul.mubr.msk.f32.vlgmr.msra.gmra.mxu1 %vm44_vm0, %v577_v46 }
 0xdfb   :  { %1046 = vmatpush3.msra.mxu1 %v1237_v1  ;;  %1053 = vmatprep.mubr.msk.f32.mxu1 %vm1201_vm1, %v1200_v0 }
 0xdfc   :  { %1047 = vmatprep.subr.mxu1 %v1200_v0 }
 0xdfd   :  { %1048 = vmatpush3.msra.mxu1 %v1239_v2 }
 0xdfe   :  { %1049 = vmatprep.subr.mxu1 %v1200_v0 }
 0xdff   :  { %1050 = vmatpush3.msra.mxu1 %v1244_v3 }
 0xe00   :  { %1051 = vmatprep.subr.mxu1 %v1200_v0 }
 0xe01   :  { %1052 = vmatpush3.msra.mxu1 %v1250_v4 }
 0xeba   :  { %v646_v48 = vpop.f32.mrf.mxu1 }
 0xebb   :  { %v650_v49 = vadd.f32 %v646_v48, %v574_v47 }
 0xebc   :  { %v1033_v50 = vpop.f32.mrf.mxu1 }
 0xebd   :  { %v923_v1 = vmul.f32 -1.442695, %v650_v49 }
 0xebf   :  { %1106 = vpow2.f32 %v923_v1 }
 0xec0   :  { %1108 = vtanh.f32 %v650_v49 }
 0xecc   :  { %v1107_v51 = vpop.eup %1106 }
 0xecd   :  { %v654_v52 = vadd.f32 1.0, %v1107_v51  ;;  %v1109_v53 = vpop.eup %1108 }
 0xecf   :  { %1110 = vrcp.f32 %v654_v52 }
 0xedc   :  { %v1111_v2 = vpop.eup %1110 }
 0xedd   :  { %v658_v54 = vsel %vm53_vm2, %v1111_v2, %v1109_v53 }
 0xede   :  { %661 = vrot.lane.b32.xlu1 %v658_v54, %s1202_s0  ;;  %v659_v4 = vmul.f32 %v658_v54, %v566_v42 }
 0xf50   :  { %v662_v0 = vpop.permute.xlu1 %661 }
 0xf51   :  { %v664_v3 = vmul.f32 %v662_v0, %v658_v54 }
 0xf53   :  { %666 = vrot.lane.b32.xlu0 %v664_v3, %s1202_s0 }
 0xfc5   :  { %v667_v55 = vpop.permute.xlu0 %666 }
 0xfc6   :  { %v669_v56 = vadd.f32 %v667_v55, %v659_v4 }
 0xfc8   :  { %1112 = vtanh.f32 %v669_v56 }
 0xfd5   :  { %v1113_v57 = vpop.eup %1112 }
 0xfd6   :  { %672 = vrot.lane.b32.xlu1 %v1113_v57, %s1202_s0 }
0x1048   :  { %v673_v58 = vpop.permute.xlu1 %672 }
0x1049   :  { %v675_v59 = vmul.f32 %v673_v58, %v658_v54 }
0x104b   :  { %679 = vrot.lane.b32.xlu0 %v675_v59, %s1203_s1 }
0x10bd   :  { %v680_v60 = vpop.permute.xlu0 %679 }
0x10be   :  { %1043 = vmatmul.mubr.msk.f32.vlgmr.msra.gmra.mxu0 %vm44_vm0, %v680_v60 }
0x117e   :  { %v749_v62 = vpop.f32.mrf.mxu0 }
0x117f   :  { %v753_v63 = vadd.f32 %v749_v62, %v677_v61 }
0x1180   :  { %v1044_v5 = vpop.f32.mrf.mxu0 }
0x1181   :  { %v925_v6 = vmul.f32 -1.442695, %v753_v63 }
0x1183   :  { %1114 = vpow2.f32 %v925_v6 }
0x1184   :  { %1116 = vtanh.f32 %v753_v63 }
0x1190   :  { %v1115_v7 = vpop.eup %1114 }
0x1191   :  { %v757_v8 = vadd.f32 1.0, %v1115_v7  ;;  %v1117_v9 = vpop.eup %1116 }
0x1193   :  { %1118 = vrcp.f32 %v757_v8 }
0x11a0   :  { %v1119_v10 = vpop.eup %1118 }
0x11a1   :  { %v761_v11 = vsel %vm53_vm2, %v1119_v10, %v1117_v9 }
0x11a2   :  { %764 = vrot.lane.b32.xlu1 %v761_v11, %s1202_s0  ;;  %v762_v15 = vmul.f32 %v761_v11, %v669_v56 }
0x1214   :  { %v765_v12 = vpop.permute.xlu1 %764 }
0x1215   :  { %v767_v13 = vmul.f32 %v765_v12, %v761_v11 }
0x1217   :  { %769 = vrot.lane.b32.xlu0 %v767_v13, %s1202_s0 }
0x1289   :  { %v770_v16 = vpop.permute.xlu0 %769 }
0x128a   :  { %v772_v17 = vadd.f32 %v770_v16, %v762_v15 }
0x128c   :  { %1120 = vtanh.f32 %v772_v17 }
0x1299   :  { %v1121_v18 = vpop.eup %1120 }
0x129a   :  { %775 = vrot.lane.b32.xlu1 %v1121_v18, %s1202_s0 }
0x130c   :  { %v776_v19 = vpop.permute.xlu1 %775 }
0x130d   :  { %v778_v20 = vmul.f32 %v776_v19, %v761_v11 }
0x130f   :  { %782 = vrot.lane.b32.xlu0 %v778_v20, %s1203_s1 }
0x1381   :  { %v783_v21 = vpop.permute.xlu0 %782 }
0x1382   :  { %1054 = vmatmul.mubr.msk.f32.vlgmr.msra.gmra.mxu1 %vm44_vm0, %v783_v21 }
0x1442   :  { %v852_v23 = vpop.f32.mrf.mxu1 }
0x1443   :  { %v856_v24 = vadd.f32 %v852_v23, %v780_v22 }
0x1444   :  { %v1055_v25 = vpop.f32.mrf.mxu1 }
0x1445   :  { %v927_v26 = vmul.f32 -1.442695, %v856_v24 }
0x1447   :  { %1122 = vpow2.f32 %v927_v26 }
0x1448   :  { %1124 = vtanh.f32 %v856_v24 }
0x1454   :  { %v1123_v27 = vpop.eup %1122 }
0x1455   :  { %v860_v28 = vadd.f32 1.0, %v1123_v27  ;;  %v1125_v29 = vpop.eup %1124 }
0x1457   :  { %1126 = vrcp.f32 %v860_v28 }
0x1464   :  { %v1127_v30 = vpop.eup %1126 }
0x1465   :  { %v864_v31 = vsel %vm53_vm2, %v1127_v30, %v1125_v29 }
0x1466   :  { %867 = vrot.lane.b32.xlu1 %v864_v31, %s1202_s0  ;;  %v865_v34 = vmul.f32 %v864_v31, %v772_v17 }
0x14d8   :  { %v868_v32 = vpop.permute.xlu1 %867 }
0x14d9   :  { %v870_v33 = vmul.f32 %v868_v32, %v864_v31 }
0x14db   :  { %872 = vrot.lane.b32.xlu0 %v870_v33, %s1202_s0 }
0x154d   :  { %v873_v35 = vpop.permute.xlu0 %872 }
0x154e   :  { %v875_v36 = vadd.f32 %v873_v35, %v865_v34 }
0x1550   :  { %1128 = vtanh.f32 %v875_v36 }
0x155d   :  { %v1129_v37 = vpop.eup %1128 }
0x155e   :  { %878 = vrot.lane.b32.xlu1 %v1129_v37, %s1202_s0 }
0x1562   :  { %888 = vrot.lane.b32.xlu1 %v875_v36, %s1204_s21 }
0x15d0   :  { %v879_v38 = vpop.permute.xlu1 %878 }
0x15d1   :  { %v881_v39 = vmul.f32 %v879_v38, %v864_v31 }
0x15d3   :  { %883 = vrot.lane.b32.xlu0 %v881_v39, %s1203_s1 }
0x15d4   :  { %v889_v14 = vpop.permute.xlu1 %888 }
0x15d5   :  { %891 = vst.msk [vmem:[#allocation3] sm:$0xff] %vm44_vm0, %v889_v14 }
0x1645   :  { %v884_v40 = vpop.permute.xlu0 %883 }
0x1646   :  { %886 = vst.msk [vmem:[#allocation2] sm:$0xff] %vm44_vm0, %v884_v40  ;;  %895 = vst.msk [vmem:[#allocation9] sm:$0xff] %vm44_vm0, %v884_v40 }
0x1647   :  { %1181 = shalt.err (!%p1178_p0)
}
0x1648   :  { %905 = dma.vmem_to_hbm [thread:$0]  %s903_s23, 128, %s1387_s2, [#allocation6]  }
0x1649   :  { %1194 = dma.done.wait [#allocation6], 128  }
0x164a   :  { %1195 = vsyncadd [#allocation6], 4294967168 }
0x164b   :  { %909 = vsyncpa [#allocation5], 1 }
0x164c   :  { %910 = vsyncpa [#allocation8], 1 }
0x164d   :  { %911 = vsyncpa [#allocation6], 1 }

</bundles_post_ra>
